<compile_context>
chip_gen: v7x
topology: tpu7x:2x2x1
jax: 0.10.0
libtpu: 0.0.40
codegen_flags: <defaults>
</compile_context>

<pallas_src>
import functools

import jax
import jax.numpy as jnp
from jax.experimental import pallas as pl
from jax.experimental.pallas import tpu as pltpu


_FALLBACK_VMEM_CAP = 64 * 1024 * 1024  # conservative: v7x physical VMEM per TC


def _largest_tile(total, quantum, cap):
    """Largest multiple of `quantum` that divides `total` and is <= cap, or None."""
    cand = min(cap, total)
    cand -= cand % quantum
    while cand >= quantum:
        if total % cand == 0:
            return cand
        cand -= quantum
    return None


def _sublane_pack(dtype):
    """Rows per packed vreg for this dtype: 8 (f32), 16 (bf16), 32 (int8/fp8)."""
    return max(8, 32 // max(1, jnp.dtype(dtype).itemsize))


def _vmem_capacity_bytes():
    try:
        return int(pltpu.get_tpu_info().vmem_capacity_bytes)
    except Exception:
        return _FALLBACK_VMEM_CAP


def gap_kernel(x_ref, o_ref, acc_ref, *, inv_t, sub, fold):
    """One (batch-tile, T-tile) step of the mean-over-T reduction.

    x_ref:   (TB, TT, CF) input tile (CF = fold * C lanes).
    o_ref:   (TB, C) output tile -- same block for every T step, written last.
    acc_ref: (TB, SUB, CF) f32 scratch; SUB sublane groups keep the per-step
             accumulation as vreg-aligned VPU adds (no per-step XLU reduce).
    """
    t = pl.program_id(1)

    @pl.when(t == 0)
    def _init():
        acc_ref[...] = jnp.zeros_like(acc_ref)

    x = x_ref[...].astype(jnp.float32)
    tb, tt, cf = x.shape
    if sub > 1:
        # (TB, TT, CF) -> (TB, TT//SUB, SUB, CF): the split is along the 8-row
        # sublane boundary, so summing axis=1 just adds whole vregs (VPU only).
        acc_ref[...] += x.reshape(tb, tt // sub, sub, cf).sum(axis=1)
    else:
        acc_ref[...] += x.sum(axis=1, keepdims=True)

    @pl.when(t == pl.num_programs(1) - 1)
    def _finalize():
        total = acc_ref[...].sum(axis=1)  # (TB, CF): single cross-sublane reduce
        if fold > 1:
            # Undo the wrapper's T->lane fold: lane j*C + c holds the partial
            # sum over {t : t % fold == j}; add the fold groups once.
            c_out = cf // fold
            folded = total[:, 0:c_out]
            for j in range(1, fold):
                folded = folded + total[:, j * c_out:(j + 1) * c_out]
            total = folded
        o_ref[...] = (total * inv_t).astype(o_ref.dtype)


def gap(x, *, vmem_budget_bytes=None):
    """x: (..., T, C) -> (..., C), mean over dim=-2 (matches torch x.mean(dim=-2))."""
    orig_shape = x.shape
    T, C = orig_shape[-2], orig_shape[-1]
    lead = orig_shape[:-2]
    B = 1
    for d in lead:
        B *= d
    x3 = x.reshape(B, T, C)

    in_itemsize = jnp.dtype(x.dtype).itemsize
    out_itemsize = in_itemsize

    # --- Lane fold for small C: pack `fold` consecutive T rows into the lane
    # dim so hot-loop vregs/loads are lane-dense. Contiguous view: free.
    fold = 1
    if C < 128:
        for k in range(max(1, 128 // C), 1, -1):
            if T % k == 0:
                fold = k
                break
    Tf, Cf = T // fold, C * fold
    if fold > 1:
        x3 = x3.reshape(B, Tf, Cf)

    # --- Generation-aware VMEM policy (per-input-buffer budget).
    vmem_cap = _vmem_capacity_bytes()
    if vmem_budget_bytes is None:
        vmem_budget_bytes = min(12 * 1024 * 1024, vmem_cap // 5)
    vmem_budget_bytes = max(int(vmem_budget_bytes), 8 * 1024)

    # --- Batch tile: output block is (TB, C), so TB must be a multiple of 8 or
    # the full B. Prefer the dtype sublane pack for dense packed stores.
    q_out = _sublane_pack(x.dtype)
    TB = _largest_tile(B, q_out, cap=64) or _largest_tile(B, 8, cap=64)
    if TB is None:
        TB = B
    # Megacore (v7x): keep at least two "parallel" batch blocks when possible.
    if B // TB < 2 and TB // 2 >= 8:
        smaller = _largest_tile(B, 8, cap=TB // 2)
        if smaller is not None:
            TB = smaller

    # --- Reduction tile over T': largest dtype-pack multiple dividing Tf whose
    # (TB, TT, Cf) buffer stays within the per-buffer budget (no artificial cap).
    q_in = _sublane_pack(x.dtype)
    row_bytes = max(1, TB * Cf * in_itemsize)
    cap_tt = max(1, vmem_budget_bytes // row_bytes)
    TT = _largest_tile(Tf, q_in, cap_tt) or _largest_tile(Tf, 8, cap_tt)
    if TT is None:
        TT = Tf  # full-extent block is always legal (e.g. Tf < 8 / indivisible)

    sub = 8 if TT % 8 == 0 else 1
    grid = (B // TB, Tf // TT)

    kernel = functools.partial(gap_kernel, inv_t=1.0 / T, sub=sub, fold=fold)

    # Resident VMEM: 2x double-buffered input tile + 2x output tile + scratch.
    resident = (2 * TB * TT * Cf * in_itemsize
                + 2 * TB * C * out_itemsize
                + TB * sub * Cf * 4)
    vmem_limit = int(min(max(resident + (4 << 20), 16 << 20), int(vmem_cap * 0.75)))

    cost = pl.CostEstimate(
        flops=B * T * C,  # one add per input element
        transcendentals=0,
        bytes_accessed=B * T * C * in_itemsize + B * C * out_itemsize,
    )

    out = pl.pallas_call(
        kernel,
        out_shape=jax.ShapeDtypeStruct((B, C), x.dtype),
        grid_spec=pltpu.PrefetchScalarGridSpec(
            num_scalar_prefetch=0,
            grid=grid,
            in_specs=[pl.BlockSpec((TB, TT, Cf), lambda b, t: (b, t, 0))],
            out_specs=pl.BlockSpec((TB, C), lambda b, t: (b, 0)),
            scratch_shapes=[pltpu.VMEM((TB, sub, Cf), jnp.float32)],
        ),
        compiler_params=pltpu.CompilerParams(
            dimension_semantics=("parallel", "arbitrary"),
            vmem_limit_bytes=vmem_limit,
        ),
        cost_estimate=cost,
    )(x3)

    return out.reshape(lead + (C,))


if __name__ == "__main__":
    key = jax.random.PRNGKey(0)

    # Shapes implied by the module's typical use: batch=2, seq=8, hidden=32.
    # Exercises the lane-fold path (C=32 -> fold=4, Cf=128).
    B, T, C = 2, 8, 32
    x = jax.random.normal(key, (B, T, C), dtype=jnp.float32)
    out = jax.block_until_ready(gap(x))
    ref = jnp.mean(x, axis=-2)
    assert out.shape == (B, C)
    assert jnp.allclose(out, ref, atol=1e-5, rtol=1e-5)

    # Tiled-reduction / accumulator path (tiny budget forces many T steps), bf16.
    B2, T2, C2 = 8, 64, 128
    x2 = jax.random.normal(jax.random.PRNGKey(1), (B2, T2, C2), dtype=jnp.bfloat16)
    out2 = jax.block_until_ready(gap(x2, vmem_budget_bytes=16 * 1024))
    ref2 = jnp.mean(x2.astype(jnp.float32), axis=-2).astype(jnp.bfloat16)
    assert out2.shape == (B2, C2)
    assert jnp.allclose(
        out2.astype(jnp.float32), ref2.astype(jnp.float32), atol=2e-2, rtol=2e-2
    )

    # Multiple leading dims + default (large-tile, generation-aware) budget,
    # sublane-grouped accumulation + lane fold together.
    x3 = jax.random.normal(jax.random.PRNGKey(2), (2, 3, 16, 64), dtype=jnp.float32)
    out3 = jax.block_until_ready(gap(x3))
    ref3 = jnp.mean(x3, axis=-2)
    assert out3.shape == (2, 3, 64)
    assert jnp.allclose(out3, ref3, atol=1e-5, rtol=1e-5)

    print("KERNEL_OK")
</pallas_src>

<mosaic_0001>
module attributes {stable_mosaic.version = 11 : i64} {
  func.func @gap_kernel(%arg0: i32, %arg1: i32, %arg2: memref<2x2x128xf32, #tpu.memory_space<vmem>>, %arg3: memref<2x32xf32, #tpu.memory_space<vmem>>, %arg4: memref<2x1x128xf32, #tpu.memory_space<vmem>>) attributes {dimension_semantics = [#tpu.dimension_semantics<parallel>, #tpu.dimension_semantics<arbitrary>], iteration_bounds = array<i64: 1, 1>, scalar_prefetch = 0 : i64, scratch_operands = 1 : i64, tpu.core_type = #tpu.core_type<tc>, window_params = [{transform_indices = @transform_0, window_bounds = array<i64: 2, 2, 128>}, {transform_indices = @transform_1, window_bounds = array<i64: 2, 32>}]} {
    %c0_i32 = arith.constant 0 : i32
    %0 = arith.cmpi eq, %arg1, %c0_i32 : i32
    %1 = arith.extui %0 : i1 to i32
    %c0_i32_0 = arith.constant 0 : i32
    %2 = arith.cmpi ne, %1, %c0_i32_0 : i32
    scf.if %2 {
      %cst_11 = arith.constant 0.000000e+00 : f32
      %12 = vector.broadcast %cst_11 : f32 to vector<2x1x128xf32>
      %c0_12 = arith.constant 0 : index
      %c0_13 = arith.constant 0 : index
      %c0_14 = arith.constant 0 : index
      %13 = vector.load %arg4[%c0_12, %c0_13, %c0_14] : memref<2x1x128xf32, #tpu.memory_space<vmem>>, vector<2x1x128xf32>
      tpu.vector_store %arg4[%c0_12, %c0_13, %c0_14], %12 {strides = array<i32>} : memref<2x1x128xf32, #tpu.memory_space<vmem>>, vector<2x1x128xf32>,
    } else {
    }
    %c0 = arith.constant 0 : index
    %c0_1 = arith.constant 0 : index
    %c0_2 = arith.constant 0 : index
    %3 = vector.load %arg2[%c0, %c0_1, %c0_2] : memref<2x2x128xf32, #tpu.memory_space<vmem>>, vector<2x2x128xf32>
    %c0_3 = arith.constant 0 : index
    %c0_4 = arith.constant 0 : index
    %c0_5 = arith.constant 0 : index
    %4 = vector.load %arg4[%c0_3, %c0_4, %c0_5] : memref<2x1x128xf32, #tpu.memory_space<vmem>>, vector<2x1x128xf32>
    %cst = arith.constant dense<0.000000e+00> : vector<2x128xf32>
    %5 = vector.multi_reduction <add>, %3, %cst [1] : vector<2x2x128xf32> to vector<2x128xf32>
    %6 = vector.shape_cast %5 : vector<2x128xf32> to vector<2x1x128xf32>
    %7 = arith.addf %4, %6 : vector<2x1x128xf32>
    %c0_6 = arith.constant 0 : index
    %c0_7 = arith.constant 0 : index
    %c0_8 = arith.constant 0 : index
    %8 = vector.load %arg4[%c0_6, %c0_7, %c0_8] : memref<2x1x128xf32, #tpu.memory_space<vmem>>, vector<2x1x128xf32>
    tpu.vector_store %arg4[%c0_6, %c0_7, %c0_8], %7 {strides = array<i32>} : memref<2x1x128xf32, #tpu.memory_space<vmem>>, vector<2x1x128xf32>,
    %c0_i32_9 = arith.constant 0 : i32
    %9 = arith.cmpi eq, %arg1, %c0_i32_9 : i32
    %10 = arith.extui %9 : i1 to i32
    %c0_i32_10 = arith.constant 0 : i32
    %11 = arith.cmpi ne, %10, %c0_i32_10 : i32
    scf.if %11 {
      %c0_11 = arith.constant 0 : index
      %c0_12 = arith.constant 0 : index
      %c0_13 = arith.constant 0 : index
      %12 = vector.load %arg4[%c0_11, %c0_12, %c0_13] : memref<2x1x128xf32, #tpu.memory_space<vmem>>, vector<2x1x128xf32>
      %cst_14 = arith.constant dense<0.000000e+00> : vector<2x128xf32>
      %13 = vector.multi_reduction <add>, %12, %cst_14 [1] : vector<2x1x128xf32> to vector<2x128xf32>
      %14 = vector.extract_strided_slice %13 {offsets = [0, 0], sizes = [2, 32], strides = [1, 1]} : vector<2x128xf32> to vector<2x32xf32>
      %15 = vector.extract_strided_slice %13 {offsets = [0, 32], sizes = [2, 32], strides = [1, 1]} : vector<2x128xf32> to vector<2x32xf32>
      %16 = arith.addf %14, %15 : vector<2x32xf32>
      %17 = vector.extract_strided_slice %13 {offsets = [0, 64], sizes = [2, 32], strides = [1, 1]} : vector<2x128xf32> to vector<2x32xf32>
      %18 = arith.addf %16, %17 : vector<2x32xf32>
      %19 = vector.extract_strided_slice %13 {offsets = [0, 96], sizes = [2, 32], strides = [1, 1]} : vector<2x128xf32> to vector<2x32xf32>
      %20 = arith.addf %18, %19 : vector<2x32xf32>
      %cst_15 = arith.constant 1.250000e-01 : f32
      %21 = vector.broadcast %cst_15 : f32 to vector<2x32xf32>
      %22 = arith.mulf %20, %21 : vector<2x32xf32>
      %c0_16 = arith.constant 0 : index
      %c0_17 = arith.constant 0 : index
      %23 = vector.load %arg3[%c0_16, %c0_17] : memref<2x32xf32, #tpu.memory_space<vmem>>, vector<2x32xf32>
      tpu.vector_store %arg3[%c0_16, %c0_17], %22 {strides = array<i32>} : memref<2x32xf32, #tpu.memory_space<vmem>>, vector<2x32xf32>,
    } else {
    }
    return
  }
  func.func @transform_0(%arg0: i32, %arg1: i32) -> (i32, i32, i32) {
    %c0_i32 = arith.constant 0 : i32
    %c0_i32_0 = arith.constant 0 : i32
    return %arg0, %arg1, %c0_i32 : i32, i32, i32
  }
  func.func @transform_1(%arg0: i32, %arg1: i32) -> (i32, i32) {
    %c0_i32 = arith.constant 0 : i32
    %c0_i32_0 = arith.constant 0 : i32
    return %arg0, %c0_i32 : i32, i32
  }
}

</mosaic_0001>

<bundles_post_ra>
// kernel: tpu_custom_call.1
= control target key start
LH: loop header
LB: loop body
LE: loop exit
PB: predicated region body
PF: predicated region fallthrough
CT: control target
= control target key end

     0   :  { %6 = vsyncpa [#allocation4], 0  ;;  %s224_s0 = inlined_call_operand.hbm [shape: f32[2,2,128], index: 0, kind: input, shape index: {}]   ;;  %s225_s1 = inlined_call_operand.hbm [shape: f32[2,32], index: 1, kind: output, shape index: {}]  }
   0x1   :  { %7 = vsyncpa [#allocation5], 0  ;;  %s178_s6 = smov [#allocation3]   ;;  %s130_s10 = scalar_lea.hbm %s224_s0, 64 }
   0x2   :  { %s13_s7 = sshll.u32 %s178_s6, 4  ;;  %p131_p0 = scmp.ne.s32.totalorder %s224_s0, %s130_s10  ;;  %s14_s7 = int_to_ptr.vmem [resolvable:$true] %s13_s7 }
   0x3   :  { %p134_p1 = scmp.lt.u32.totalorder %s130_s10, %s224_s0 }
   0x5   :  { %p136_p2 = pnand %p134_p1, %p131_p0 }
   0x7   :  { %139 = shalt.err (!%p136_p2)
}
   0x8   :  { %s140_s15 = scalar_lea.vmem %s14_s7, 64  ;;  %p145_p4 = scmp.lt.s32.totalorder %s14_s7, %s14_s7 }
   0x9   :  { %p141_p3 = scmp.ne.s32.totalorder %s14_s7, %s140_s15  ;;  %p146_p5 = scmp.lt.s32.totalorder %s140_s15, %s140_s15 }
   0xb   :  { %p147_p6 = por %p146_p5, %p145_p4 }
   0xd   :  { %p148_p7 = pnand %p147_p6, %p141_p3 }
   0xf   :  { %151 = shalt.err (!%p148_p7)
}
  0x10   :  { %s179_s16 = smov 32   ;;  %s180_s17 = smov 2  }
  0x11   :  { %19 = dma.hbm_to_vmem [thread:$0]  %s224_s0, 64, %s14_s7, [#allocation4], %s179_s16, %s179_s16, %s180_s17  }
  0x12   :  { %174 = dma.done.wait [#allocation4], 64  }
  0x13   :  { %175 = vsyncadd [#allocation4], 4294967232  ;;  %v181_v0 = vmov 0.0   ;;  %vm33_vm0 = vcmask 1041408   ;;  %v29_v1 = vld [vmem:[#allocation3] sm:$0x3]  ;;  %v93_v28 = vlaneseq }
  0x14   :  { %27 = vst [vmem:[#allocation2] sm:$0x1] %v181_v0  ;;  %28 = vst [vmem:[#allocation2 + $0x1] sm:$0x1] %v181_v0  ;;  %v30_v2 = vld [vmem:[#allocation3 + $0x2] sm:$0x3] }
  0x15   :  { %v34_v3 = vsel %vm33_vm0, %v29_v1, 0.0  ;;  %v41_v4 = vsel %vm33_vm0, %v30_v2, 0.0  ;;  %s182_s0 = smov 64   ;;  %s183_s20 = smov 96   ;;  %v184_v26 = vmov 1966171168  }
  0x16   :  { %v35_v5 = vrot.slane %v34_v3, 4  ;;  %v42_v6 = vrot.slane %v41_v4, 4  ;;  %v91_v27 = vunpack.c.l.s4 %v184_v26  ;;  %v94_v35 = vshrl.u32 %v93_v28, 7  ;;  %s185_s21 = smov [#allocation6]  }
  0x17   :  { %s113_s22 = sshll.u32 %s185_s21, 4  ;;  %vm105_vm1 = vcmask 254976   ;;  %s114_s22 = int_to_ptr.vmem [resolvable:$true] %s113_s22 }
  0x18   :  { %v36_v7 = vadd.f32 %v35_v5, %v34_v3  ;;  %v43_v8 = vadd.f32 %v42_v6, %v41_v4  ;;  %v92_v34 = vunpack.c.0.s8 %v91_v27  ;;  %s152_s23 = scalar_lea.vmem %s114_s22, 32  ;;  %p157_p9 = scmp.lt.s32.totalorder %s114_s22, %s114_s22 }
  0x19   :  { %p153_p8 = scmp.ne.s32.totalorder %s114_s22, %s152_s23  ;;  %p158_p10 = scmp.lt.s32.totalorder %s152_s23, %s152_s23 }
  0x1a   :  { %v37_v9 = vrot.slane %v36_v7, 2  ;;  %v44_v10 = vrot.slane %v43_v8, 2  ;;  %v95_v41 = vsub.s32 %v92_v34, %v94_v35 }
  0x1b   :  { %v31_v15 = vld [vmem:[#allocation2] sm:$0x1]  ;;  %v32_v16 = vld [vmem:[#allocation2 + $0x1] sm:$0x1]  ;;  %p159_p11 = por %p158_p10, %p157_p9 }
  0x1c   :  { %v38_v11 = vadd.f32 %v37_v9, %v36_v7  ;;  %v45_v12 = vadd.f32 %v44_v10, %v43_v8 }
  0x1d   :  { %p160_p12 = pnand %p159_p11, %p153_p8 }
  0x1e   :  { %v39_v13 = vrot.slane %v38_v11, 1  ;;  %v46_v14 = vrot.slane %v45_v12, 1 }
  0x20   :  { %v40_v17 = vadd.f32 %v39_v13, %v38_v11  ;;  %v47_v18 = vadd.f32 %v46_v14, %v45_v12 }
  0x22   :  { %v48_v19 = vadd.f32 %v40_v17, %v31_v15  ;;  %v49_v20 = vadd.f32 %v47_v18, %v32_v16 }
  0x24   :  { %50 = vst [vmem:[#allocation2] sm:$0x1] %v48_v19  ;;  %51 = vst [vmem:[#allocation2 + $0x1] sm:$0x1] %v49_v20 }
  0x2b   :  { %v55_v21 = vld [vmem:[#allocation2] sm:$0x1]  ;;  %v56_v22 = vld [vmem:[#allocation2 + $0x1] sm:$0x1] }
  0x2c   :  { %69 = vrot.lane.b32.xlu1 %v55_v21, %s182_s0  ;;  %61 = vrot.lane.b32.xlu0 %v55_v21, %s183_s20 }
  0x30   :  { %71 = vrot.lane.b32.xlu1 %v56_v22, %s182_s0  ;;  %63 = vrot.lane.b32.xlu0 %v56_v22, %s183_s20 }
  0x34   :  { %79 = vrot.lane.b32.xlu1 %v56_v22, %s179_s16  ;;  %77 = vrot.lane.b32.xlu0 %v55_v21, %s179_s16 }
  0x9e   :  { %v70_v23 = vpop.permute.xlu1 %69  ;;  %v62_v24 = vpop.permute.xlu0 %61 }
  0x9f   :  { %v67_v25 = vadd.f32 %v62_v24, %v55_v21 }
  0xa1   :  { %v75_v33 = vadd.f32 %v70_v23, %v67_v25 }
  0xa2   :  { %v72_v29 = vpop.permute.xlu1 %71  ;;  %v64_v30 = vpop.permute.xlu0 %63 }
  0xa3   :  { %v68_v31 = vadd.f32 %v64_v30, %v56_v22 }
  0xa5   :  { %v76_v32 = vadd.f32 %v72_v29, %v68_v31 }
  0xa6   :  { %v80_v36 = vpop.permute.xlu1 %79  ;;  %v78_v37 = vpop.permute.xlu0 %77 }
  0xa7   :  { %v84_v38 = vadd.f32 %v80_v36, %v76_v32  ;;  %v83_v39 = vadd.f32 %v78_v37, %v75_v33 }
  0xa9   :  { %v86_v40 = vmul.f32 0.125, %v84_v38  ;;  %v85_v42 = vmul.f32 0.125, %v83_v39 }
  0xab   :  { %v89_v43 = vcombine.low %v85_v42, %v86_v40 }
  0xad   :  { %v96_v44 = vrot.slane %v89_v43, %v95_v41 }
  0xaf   :  { %v103_v45 = vrot.slane %v96_v44, %v95_v41 }
  0xb1   :  { %106 = vst.msk [vmem:[#allocation6] sm:$0x3] %vm105_vm1, %v103_v45 }
  0xb2   :  { %163 = shalt.err (!%p160_p12)
}
  0xb3   :  { %s164_s26 = scalar_lea.hbm %s225_s1, 32 }
  0xb4   :  { %p165_p13 = scmp.ne.s32.totalorder %s225_s1, %s164_s26  ;;  %p168_p0 = scmp.lt.u32.totalorder %s164_s26, %s225_s1 }
  0xb6   :  { %p170_p1 = pnand %p168_p0, %p165_p13 }
  0xb8   :  { %173 = shalt.err (!%p170_p1)
}
  0xb9   :  { %116 = dma.vmem_to_hbm [thread:$0]  %s114_s22, 32, %s225_s1, [#allocation5]  }
  0xba   :  { %176 = dma.done.wait [#allocation5], 32  }
  0xbb   :  { %177 = vsyncadd [#allocation5], 4294967264 }
  0xbc   :  { %120 = vsyncpa [#allocation4], 1 }
  0xbd   :  { %121 = vsyncpa [#allocation5], 1 }

</bundles_post_ra>
